<compile_context>
chip_gen: v6e
topology: v6e:2x2x1
jax: 0.10.0
libtpu: 0.0.40
codegen_flags: <defaults>
</compile_context>

<pallas_src>
import functools

import jax
import jax.numpy as jnp
from jax import lax
from jax.experimental import pallas as pl
from jax.experimental.pallas import tpu as pltpu

LANES = 128
SUBLANES = 8
TARGET_BLOCK_BYTES = 4 * 1024 * 1024   # ~4 MiB per input per block (review: 2-4 MiB)
INNER_ROWS = 256                        # rows per inner accumulation sub-slice
NCORE_SPLIT = 2                         # leading 'parallel' axis (dual-TC on v7x)
VMEM_LIMIT_BYTES = 32 * 1024 * 1024     # covers 2 inputs x 2 buffers x 4 MiB everywhere


def _round_up(a, b):
    return ((a + b - 1) // b) * b


def _dice_partials_kernel(x_ref, t_ref, o_ref, acc_xt_ref, acc_sum_ref, *,
                          rows, tile_rows, inner_rows, steps_per_split,
                          full_steps, needs_mask, unroll):
    c = pl.program_id(0)                # parallel split (one TensorCore each on v7x)
    i = pl.program_id(1)                # sequential row-tile step within the split
    gstep = c * steps_per_split + i     # global row-tile index

    @pl.when(i == 0)
    def _():
        acc_xt_ref[...] = jnp.zeros_like(acc_xt_ref)
        acc_sum_ref[...] = jnp.zeros_like(acc_sum_ref)

    n_sub = tile_rows // inner_rows

    def accumulate(masked):
        def body(j, carry):
            start = j * inner_rows
            idx = pl.ds(pl.multiple_of(start, inner_rows), inner_rows)
            x = x_ref[idx, :].astype(jnp.float32)
            t = t_ref[idx, :].astype(jnp.float32)
            if masked:
                # Zero rows lying past the array (Pallas block padding is undefined,
                # and clamped out-of-range padded steps must contribute nothing).
                row0 = gstep * tile_rows + start
                row_ids = lax.broadcasted_iota(jnp.int32, x.shape, 0) + row0
                valid = row_ids < rows
                x = jnp.where(valid, x, 0.0)
                t = jnp.where(valid, t, 0.0)
            # Pure-VPU accumulation into vreg-shaped (8,128) accumulators.
            xt = (x * t).reshape(inner_rows // SUBLANES, SUBLANES, LANES)
            s = (x + t).reshape(inner_rows // SUBLANES, SUBLANES, LANES)
            acc_xt_ref[...] += jnp.sum(xt, axis=0)
            acc_sum_ref[...] += jnp.sum(s, axis=0)
            return carry

        lax.fori_loop(0, n_sub, body, 0, unroll=unroll)

    if needs_mask:
        # Mask work only on the (few) steps that extend past the array.
        @pl.when(gstep < full_steps)
        def _():
            accumulate(False)

        @pl.when(gstep >= full_steps)
        def _():
            accumulate(True)
    else:
        accumulate(False)

    @pl.when(i == steps_per_split - 1)
    def _():
        # Single end-of-split XLU reduce; dice formula is finalized in the wrapper.
        o_ref[0, 0] = jnp.sum(acc_xt_ref[...])
        o_ref[0, 1] = jnp.sum(acc_sum_ref[...])


def dice_loss(inputs, targets, smooth=1.0, block_bytes=TARGET_BLOCK_BYTES):
    """Pallas implementation of DiceLoss.forward (returns a scalar f32)."""
    assert inputs.shape == targets.shape, "inputs/targets must match shapes"
    x = jnp.ravel(inputs)
    t = jnp.ravel(targets)
    n = x.shape[0]

    # Minimal pad only when n is not a multiple of the 128-lane width (zero
    # padding is sum-neutral).
    rem = n % LANES
    if rem:
        pad = LANES - rem
        x = jnp.pad(x, (0, pad))
        t = jnp.pad(t, (0, pad))
    rows = x.shape[0] // LANES
    x2 = x.reshape(rows, LANES)
    t2 = t.reshape(rows, LANES)

    itemsize_x = max(jnp.dtype(x.dtype).itemsize, 1)
    itemsize_t = max(jnp.dtype(t.dtype).itemsize, 1)
    # Sublane granule: 8 rows for 32-bit, 16 for bf16/f16, 32 for 8-bit dtypes.
    granule = SUBLANES * max(max(1, 4 // itemsize_x), max(1, 4 // itemsize_t))
    max_itemsize = max(itemsize_x, itemsize_t)

    # Bytes-based, dtype-aware row tile: ~block_bytes of the widest input.
    tr = max(granule, int(block_bytes) // (LANES * max_itemsize))
    tr = min(tr, _round_up(rows, granule))         # don't tile past the array
    inner = max(granule, (min(INNER_ROWS, tr) // granule) * granule)
    tr = _round_up(tr, inner)                      # block is a whole number of sub-slices

    total_steps = pl.cdiv(rows, tr)
    nsplit = min(NCORE_SPLIT, total_steps)
    steps_per_split = pl.cdiv(total_steps, nsplit)
    padded_steps = nsplit * steps_per_split

    full_steps = rows // tr                        # steps entirely inside the array
    needs_mask = (rows % tr != 0) or (padded_steps > total_steps)
    n_sub = tr // inner
    unroll = True if n_sub <= 4 else 2

    def in_map(c, i):
        # Clamp padded steps (when total_steps doesn't split evenly) onto a real
        # block; their contribution is zeroed by the in-kernel mask.
        return (jnp.minimum(c * steps_per_split + i, total_steps - 1), 0)

    kernel = functools.partial(
        _dice_partials_kernel,
        rows=rows,
        tile_rows=tr,
        inner_rows=inner,
        steps_per_split=steps_per_split,
        full_steps=full_steps,
        needs_mask=needs_mask,
        unroll=unroll,
    )

    cost = pl.CostEstimate(
        flops=4 * x2.size,
        transcendentals=0,
        bytes_accessed=int(x2.size * itemsize_x + t2.size * itemsize_t + nsplit * 2 * 4),
    )

    partials = pl.pallas_call(
        kernel,
        out_shape=jax.ShapeDtypeStruct((nsplit, 2), jnp.float32),
        grid_spec=pltpu.PrefetchScalarGridSpec(
            num_scalar_prefetch=0,
            grid=(nsplit, steps_per_split),
            in_specs=[
                pl.BlockSpec((tr, LANES), in_map),
                pl.BlockSpec((tr, LANES), in_map),
            ],
            out_specs=pl.BlockSpec((1, 2), lambda c, i: (c, 0),
                                   memory_space=pltpu.SMEM),
            scratch_shapes=[
                pltpu.VMEM((SUBLANES, LANES), jnp.float32),  # sum(x * t) partials
                pltpu.VMEM((SUBLANES, LANES), jnp.float32),  # sum(x) + sum(t) partials
            ],
        ),
        compiler_params=pltpu.CompilerParams(
            dimension_semantics=("parallel", "arbitrary"),
            vmem_limit_bytes=VMEM_LIMIT_BYTES,
        ),
        cost_estimate=cost,
    )(x2, t2)

    intersection = jnp.sum(partials[:, 0])
    denom = jnp.sum(partials[:, 1])                # == sum(x) + sum(t)
    dice = (2.0 * intersection + smooth) / (denom + smooth)
    return 1.0 - dice


def _dice_loss_ref(inputs, targets, smooth=1.0):
    x = jnp.ravel(inputs).astype(jnp.float32)
    t = jnp.ravel(targets).astype(jnp.float32)
    inter = jnp.sum(x * t)
    dice = (2.0 * inter + smooth) / (jnp.sum(x) + jnp.sum(t) + smooth)
    return 1.0 - dice


if __name__ == "__main__":
    key = jax.random.PRNGKey(0)
    k1, k2, k3, k4, k5, k6 = jax.random.split(key, 6)

    # 1) baseline NCHW-style segmentation logits / binary targets
    a = jax.nn.sigmoid(jax.random.normal(k1, (2, 4, 16, 16), jnp.float32))
    b = (jax.random.uniform(k2, (2, 4, 16, 16)) > 0.5).astype(jnp.float32)
    out = jax.block_until_ready(dice_loss(a, b, smooth=1.0))
    ref = _dice_loss_ref(a, b, smooth=1.0)
    assert jnp.allclose(out, ref, atol=1e-5, rtol=1e-5), (out, ref)

    # 2) ragged size -> wrapper lane pad + in-kernel tail mask
    a2 = jax.nn.sigmoid(jax.random.normal(k3, (3, 5, 13, 17), jnp.float32))
    b2 = (jax.random.uniform(k4, (3, 5, 13, 17)) > 0.5).astype(jnp.float32)
    out2 = jax.block_until_ready(dice_loss(a2, b2, smooth=1.0))
    ref2 = _dice_loss_ref(a2, b2, smooth=1.0)
    assert jnp.allclose(out2, ref2, atol=1e-5, rtol=1e-5), (out2, ref2)

    # 3) tiny blocks to exercise the multi-step grid, the 2-way parallel split,
    #    and a clamped fully-masked padded step (odd number of row tiles)
    a3 = jax.nn.sigmoid(jax.random.normal(k5, (2, 4, 28, 32), jnp.float32))
    b3 = (jax.random.uniform(k6, (2, 4, 28, 32)) > 0.5).astype(jnp.float32)
    out3 = jax.block_until_ready(dice_loss(a3, b3, smooth=1.0, block_bytes=4096))
    ref3 = _dice_loss_ref(a3, b3, smooth=1.0)
    assert jnp.allclose(out3, ref3, atol=1e-5, rtol=1e-5), (out3, ref3)

    # 4) mixed dtypes -> dtype-aware granule / block sizing + in-kernel upcast
    a4 = a.astype(jnp.bfloat16)
    out4 = jax.block_until_ready(dice_loss(a4, b, smooth=1.0))
    ref4 = _dice_loss_ref(a4, b, smooth=1.0)
    assert jnp.allclose(out4, ref4, atol=1e-4, rtol=1e-4), (out4, ref4)

    print("KERNEL_OK")
</pallas_src>

<mosaic_0001>
module attributes {stable_mosaic.version = 11 : i64} {
  func.func @_dice_partials_kernel(%arg0: i32, %arg1: i32, %arg2: memref<16x128xf32, #tpu.memory_space<vmem>>, %arg3: memref<16x128xf32, #tpu.memory_space<vmem>>, %arg4: memref<1x2xf32, #tpu.memory_space<smem>>, %arg5: memref<8x128xf32, #tpu.memory_space<vmem>>, %arg6: memref<8x128xf32, #tpu.memory_space<vmem>>) attributes {dimension_semantics = [#tpu.dimension_semantics<parallel>, #tpu.dimension_semantics<arbitrary>], iteration_bounds = array<i64: 1, 1>, scalar_prefetch = 0 : i64, scratch_operands = 2 : i64, tpu.core_type = #tpu.core_type<tc>, window_params = [{transform_indices = @transform_0, window_bounds = array<i64: 16, 128>}, {transform_indices = @transform_1, window_bounds = array<i64: 16, 128>}, {transform_indices = @transform_2, window_bounds = array<i64: 1, 2>}]} {
    %c0_i32 = arith.constant 0 : i32
    %0 = arith.cmpi eq, %arg1, %c0_i32 : i32
    %1 = arith.extui %0 : i1 to i32
    %c0_i32_0 = arith.constant 0 : i32
    %2 = arith.cmpi ne, %1, %c0_i32_0 : i32
    scf.if %2 {
      %cst_14 = arith.constant 0.000000e+00 : f32
      %24 = vector.broadcast %cst_14 : f32 to vector<8x128xf32>
      %c0_15 = arith.constant 0 : index
      %c0_16 = arith.constant 0 : index
      %25 = vector.load %arg5[%c0_15, %c0_16] : memref<8x128xf32, #tpu.memory_space<vmem>>, vector<8x128xf32>
      tpu.vector_store %arg5[%c0_15, %c0_16], %24 {strides = array<i32>} : memref<8x128xf32, #tpu.memory_space<vmem>>, vector<8x128xf32>,
      %cst_17 = arith.constant 0.000000e+00 : f32
      %26 = vector.broadcast %cst_17 : f32 to vector<8x128xf32>
      %c0_18 = arith.constant 0 : index
      %c0_19 = arith.constant 0 : index
      %27 = vector.load %arg6[%c0_18, %c0_19] : memref<8x128xf32, #tpu.memory_space<vmem>>, vector<8x128xf32>
      tpu.vector_store %arg6[%c0_18, %c0_19], %26 {strides = array<i32>} : memref<8x128xf32, #tpu.memory_space<vmem>>, vector<8x128xf32>,
    } else {
    }
    %c0_i32_1 = arith.constant 0 : i32
    %c16_i32 = arith.constant 16 : i32
    %3 = arith.muli %c0_i32_1, %c16_i32 : i32
    %4 = tpu.assume_multiple %3, 16 : i32
    %5 = arith.index_cast %4 : i32 to index
    %c0 = arith.constant 0 : index
    %6 = vector.load %arg2[%5, %c0] : memref<16x128xf32, #tpu.memory_space<vmem>>, vector<16x128xf32>
    %7 = arith.index_cast %4 : i32 to index
    %c0_2 = arith.constant 0 : index
    %8 = vector.load %arg3[%7, %c0_2] : memref<16x128xf32, #tpu.memory_space<vmem>>, vector<16x128xf32>
    %9 = arith.mulf %6, %8 : vector<16x128xf32>
    %10 = vector.shape_cast %9 : vector<16x128xf32> to vector<2x8x128xf32>
    %11 = arith.addf %6, %8 : vector<16x128xf32>
    %12 = vector.shape_cast %11 : vector<16x128xf32> to vector<2x8x128xf32>
    %c0_3 = arith.constant 0 : index
    %c0_4 = arith.constant 0 : index
    %13 = vector.load %arg5[%c0_3, %c0_4] : memref<8x128xf32, #tpu.memory_space<vmem>>, vector<8x128xf32>
    %cst = arith.constant dense<0.000000e+00> : vector<8x128xf32>
    %14 = vector.multi_reduction <add>, %10, %cst [0] : vector<2x8x128xf32> to vector<8x128xf32>
    %15 = arith.addf %13, %14 : vector<8x128xf32>
    %c0_5 = arith.constant 0 : index
    %c0_6 = arith.constant 0 : index
    %16 = vector.load %arg5[%c0_5, %c0_6] : memref<8x128xf32, #tpu.memory_space<vmem>>, vector<8x128xf32>
    tpu.vector_store %arg5[%c0_5, %c0_6], %15 {strides = array<i32>} : memref<8x128xf32, #tpu.memory_space<vmem>>, vector<8x128xf32>,
    %c0_7 = arith.constant 0 : index
    %c0_8 = arith.constant 0 : index
    %17 = vector.load %arg6[%c0_7, %c0_8] : memref<8x128xf32, #tpu.memory_space<vmem>>, vector<8x128xf32>
    %cst_9 = arith.constant dense<0.000000e+00> : vector<8x128xf32>
    %18 = vector.multi_reduction <add>, %12, %cst_9 [0] : vector<2x8x128xf32> to vector<8x128xf32>
    %19 = arith.addf %17, %18 : vector<8x128xf32>
    %c0_10 = arith.constant 0 : index
    %c0_11 = arith.constant 0 : index
    %20 = vector.load %arg6[%c0_10, %c0_11] : memref<8x128xf32, #tpu.memory_space<vmem>>, vector<8x128xf32>
    tpu.vector_store %arg6[%c0_10, %c0_11], %19 {strides = array<i32>} : memref<8x128xf32, #tpu.memory_space<vmem>>, vector<8x128xf32>,
    %c1_i32 = arith.constant 1 : i32
    %c0_i32_12 = arith.constant 0 : i32
    %21 = arith.cmpi eq, %arg1, %c0_i32_12 : i32
    %22 = arith.extui %21 : i1 to i32
    %c0_i32_13 = arith.constant 0 : i32
    %23 = arith.cmpi ne, %22, %c0_i32_13 : i32
    scf.if %23 {
      %c0_14 = arith.constant 0 : index
      %c0_15 = arith.constant 0 : index
      %24 = vector.load %arg5[%c0_14, %c0_15] : memref<8x128xf32, #tpu.memory_space<vmem>>, vector<8x128xf32>
      %25 = vector.shape_cast %24 : vector<8x128xf32> to vector<1x8x128xf32>
      %cst_16 = arith.constant dense<0.000000e+00> : vector<1xf32>
      %26 = vector.multi_reduction <add>, %25, %cst_16 [1, 2] : vector<1x8x128xf32> to vector<1xf32>
      %27 = vector.shape_cast %26 : vector<1xf32> to vector<1x1x1xf32>
      %28 = vector.extract %27[0, 0, 0] : f32 from vector<1x1x1xf32>
      %c0_17 = arith.constant 0 : index
      %c0_18 = arith.constant 0 : index
      %29 = memref.load %arg4[%c0_17, %c0_18] : memref<1x2xf32, #tpu.memory_space<smem>>
      memref.store %28, %arg4[%c0_17, %c0_18] : memref<1x2xf32, #tpu.memory_space<smem>>
      %c0_19 = arith.constant 0 : index
      %c0_20 = arith.constant 0 : index
      %30 = vector.load %arg6[%c0_19, %c0_20] : memref<8x128xf32, #tpu.memory_space<vmem>>, vector<8x128xf32>
      %31 = vector.shape_cast %30 : vector<8x128xf32> to vector<1x8x128xf32>
      %cst_21 = arith.constant dense<0.000000e+00> : vector<1xf32>
      %32 = vector.multi_reduction <add>, %31, %cst_21 [1, 2] : vector<1x8x128xf32> to vector<1xf32>
      %33 = vector.shape_cast %32 : vector<1xf32> to vector<1x1x1xf32>
      %34 = vector.extract %33[0, 0, 0] : f32 from vector<1x1x1xf32>
      %c0_22 = arith.constant 0 : index
      %c1 = arith.constant 1 : index
      %35 = memref.load %arg4[%c0_22, %c1] : memref<1x2xf32, #tpu.memory_space<smem>>
      memref.store %34, %arg4[%c0_22, %c1] : memref<1x2xf32, #tpu.memory_space<smem>>
    } else {
    }
    return
  }
  func.func @transform_0(%arg0: i32, %arg1: i32) -> (i32, i32) {
    %c1_i32 = arith.constant 1 : i32
    %0 = arith.muli %arg0, %c1_i32 : i32
    %1 = arith.addi %0, %arg1 : i32
    %c0_i32 = arith.constant 0 : i32
    %2 = arith.minsi %1, %c0_i32 : i32
    %c0_i32_0 = arith.constant 0 : i32
    %c0_i32_1 = arith.constant 0 : i32
    return %2, %c0_i32_0 : i32, i32
  }
  func.func @transform_1(%arg0: i32, %arg1: i32) -> (i32, i32) {
    %c1_i32 = arith.constant 1 : i32
    %0 = arith.muli %arg0, %c1_i32 : i32
    %1 = arith.addi %0, %arg1 : i32
    %c0_i32 = arith.constant 0 : i32
    %2 = arith.minsi %1, %c0_i32 : i32
    %c0_i32_0 = arith.constant 0 : i32
    %c0_i32_1 = arith.constant 0 : i32
    return %2, %c0_i32_0 : i32, i32
  }
  func.func @transform_2(%arg0: i32, %arg1: i32) -> (i32, i32) {
    %c0_i32 = arith.constant 0 : i32
    %c0_i32_0 = arith.constant 0 : i32
    return %arg0, %c0_i32 : i32, i32
  }
}

</mosaic_0001>

<bundles_post_ra>
// kernel: tpu_custom_call.1
= control target key start
LH: loop header
LB: loop body
LE: loop exit
PB: predicated region body
PF: predicated region fallthrough
CT: control target
= control target key end

     0   :  { %7 = vsyncpa [#allocation5], 0  ;;  %s220_s0 = inlined_call_operand.hbm [shape: f32[16,128], index: 0, kind: input, shape index: {}]   ;;  %s221_s1 = inlined_call_operand.hbm [shape: f32[16,128], index: 1, kind: input, shape index: {}]   ;;  %s222_s2 = inlined_call_operand.hbm [shape: f32[1,2], index: 2, kind: output, shape index: {}]  }
   0x1   :  { %8 = vsyncpa [#allocation8], 0 }
   0x2   :  { %9 = vsyncpa [#allocation6], 0  ;;  %s191_s9 = smov [#allocation4]  }
   0x3   :  { %s21_s10 = sshll.u32 %s191_s9, 4  ;;  %s22_s10 = int_to_ptr.vmem [resolvable:$true] %s21_s10 }
   0x4   :  { %s145_s11 = scalar_lea.vmem %s22_s10, 256  ;;  %p150_p1 = scmp.lt.s32.totalorder %s22_s10, %s22_s10 }
   0x5   :  { %p146_p0 = scmp.ne.s32.totalorder %s22_s10, %s145_s11  ;;  %p151_p2 = scmp.lt.s32.totalorder %s145_s11, %s145_s11 }
   0x7   :  { %p152_p3 = por %p151_p2, %p150_p1 }
   0x9   :  { %p153_p4 = pnand %p152_p3, %p146_p0 }
   0xb   :  { %156 = shalt.err (!%p153_p4)
}
   0xc   :  { %s192_s12 = smov 128   ;;  %s193_s13 = smov 8  }
   0xd   :  { %27 = dma.hbm_to_vmem [thread:$0]  %s220_s0, 256, %s22_s10, [#allocation5], %s192_s12, %s192_s12, %s193_s13  }
   0xe   :  { %s194_s16 = smov [#allocation7]  }
   0xf   :  { %s39_s17 = sshll.u32 %s194_s16, 4  ;;  %s40_s17 = int_to_ptr.vmem [resolvable:$true] %s39_s17 }
  0x10   :  { %s165_s18 = scalar_lea.vmem %s40_s17, 256  ;;  %p170_p6 = scmp.lt.s32.totalorder %s40_s17, %s40_s17 }
  0x11   :  { %p166_p5 = scmp.ne.s32.totalorder %s40_s17, %s165_s18  ;;  %p171_p7 = scmp.lt.s32.totalorder %s165_s18, %s165_s18 }
  0x13   :  { %p172_p8 = por %p171_p7, %p170_p6 }
  0x15   :  { %p173_p9 = pnand %p172_p8, %p166_p5 }
  0x17   :  { %176 = shalt.err (!%p173_p9)
}
  0x18   :  { %45 = dma.hbm_to_vmem [thread:$0]  %s221_s1, 256, %s40_s17, [#allocation8], %s192_s12, %s192_s12, %s193_s13  }
  0x19   :  { %185 = dma.done.wait [#allocation5], 256  }
  0x1a   :  { %186 = vsyncadd [#allocation5], 4294967040 }
  0x1b   :  { %187 = dma.done.wait [#allocation8], 256  }
  0x1c   :  { %188 = vsyncadd [#allocation8], 4294967040  ;;  %v66_v0 = vld [vmem:[#allocation4] sm:$0xff]  ;;  %v67_v1 = vld [vmem:[#allocation4 + $0x8] sm:$0xff]  ;;  %s195_s21 = smov [#allocation9]  }
  0x1d   :  { %v68_v2 = vld [vmem:[#allocation7] sm:$0xff]  ;;  %v69_v3 = vld [vmem:[#allocation7 + $0x8] sm:$0xff] }
  0x1e   :  { %v70_v4 = vmul.f32 %v68_v2, %v66_v0  ;;  %v71_v5 = vmul.f32 %v69_v3, %v67_v1  ;;  %v72_v6 = vadd.f32 %v68_v2, %v66_v0  ;;  %v73_v7 = vadd.f32 %v69_v3, %v67_v1 }
  0x20   :  { %v75_v8 = vadd.f32 %v71_v5, %v70_v4  ;;  %v79_v9 = vadd.f32 %v73_v7, %v72_v6 }
  0x22   :  { %86 = vadd.xlane.f32.xlu0 %v75_v8 }
  0x26   :  { %98 = vadd.xlane.f32.xlu0 %v79_v9 }
  0xab   :  { %v87_v10 = vpop.xlane.xlu0 %86 }
  0xac   :  { %v88_v11 = vrot.slane %v87_v10, 4 }
  0xae   :  { %v89_v12 = vadd.f32 %v88_v11, %v87_v10 }
  0xaf   :  { %v99_v13 = vpop.xlane.xlu0 %98 }
  0xb0   :  { %v90_v14 = vrot.slane %v89_v12, 2  ;;  %v100_v15 = vrot.slane %v99_v13, 4 }
  0xb2   :  { %v101_v16 = vadd.f32 %v100_v15, %v99_v13  ;;  %v91_v17 = vadd.f32 %v90_v14, %v89_v12 }
  0xb4   :  { %v102_v18 = vrot.slane %v101_v16, 2  ;;  %v92_v19 = vrot.slane %v91_v17, 1 }
  0xb6   :  { %v103_v20 = vadd.f32 %v102_v18, %v101_v16  ;;  %v93_v21 = vadd.f32 %v92_v19, %v91_v17 }
  0xb8   :  { %128 = vpush %v93_v21  ;;  %v104_v22 = vrot.slane %v103_v20, 1 }
  0xba   :  { %v105_v23 = vadd.f32 %v104_v22, %v103_v20 }
  0xbc   :  { %130 = vpush %v105_v23 }
  0xe9   :  { %s129_s0 = spop %128 }
  0xea   :  { %96 = sst [smem:[#allocation9]] %s129_s0 }
  0xed   :  { %s131_s1 = spop %130 }
  0xee   :  { %108 = sst [smem:[#allocation9 + $0x1]] %s131_s1 }
  0xef   :  { %116 = dma.smem_to_hbm %s195_s21, 16, %s222_s2, [#allocation6]  }
  0xf0   :  { %189 = dma.done.wait [#allocation6], 16  }
  0xf1   :  { %190 = vsyncadd [#allocation6], 4294967280 }
  0xf2   :  { %120 = sfence }
  0xf3   :  { %121 = vsyncpa [#allocation5], 1 }
  0xf4   :  { %122 = vsyncpa [#allocation8], 1 }
  0xf5   :  { %123 = vsyncpa [#allocation6], 1 }

</bundles_post_ra>
